<compile_context>
chip_gen: v7x
topology: tpu7x:2x2x1
jax: 0.10.0
libtpu: 0.0.40
codegen_flags: <defaults>
</compile_context>

<pallas_src>
import functools

import jax
import jax.numpy as jnp
from jax.experimental import pallas as pl
from jax.experimental.pallas import tpu as pltpu


def _softmax_kernel(x_ref, o_ref, *, feat, k):
    # The block's lane axis holds `k` logical rows of length `feat` (k == 1 on
    # the plain path).  The full feature axis of every logical row is resident
    # in the block, so the dim=-1 reductions are exact (no online softmax).
    for j in range(k):                      # static, k <= 16 -> fully unrolled
        sl = slice(j * feat, (j + 1) * feat)
        x = x_ref[:, sl].astype(jnp.float32)           # f32 compute path
        c = jnp.max(x, axis=-1, keepdims=True)         # torch.max(x, -1, keepdim=True)[0]
        e = jnp.exp(x - c)
        denom = jnp.sum(e, axis=-1, keepdims=True)
        o_ref[:, sl] = (e / denom).astype(o_ref.dtype)  # exact divide -> rows sum to 1
    # TODO(synk): bf16 elementwise path for bf16 inputs on v6e/v7x, and a
    #             roll/permute-based fully lane-dense reduction for feat < 128
    #             (the VPU work here is still feat-wide; DMAs are already dense).


def _vmem_capacity_bytes():
    # 128 MiB on v5e/v6e, 64 MiB per TensorCore on v7x.
    try:
        return int(pltpu.get_tpu_info().vmem_capacity_bytes)
    except Exception:
        return 64 * 1024 * 1024             # conservative fallback (v7x-sized)


def softmax_stable(x, *, max_block_bytes=None):
    """Numerically stable softmax over the last axis, computed in Pallas."""
    orig_shape = x.shape
    feat = orig_shape[-1]
    x2 = x.reshape(-1, feat)                # flatten leading dims
    rows = x2.shape[0]

    itemsize = jnp.dtype(x.dtype).itemsize
    pack = 8 * max(1, 4 // itemsize)        # sublane pack: 8 f32 / 16 bf16 / 32 int8

    # ---- feat < 128: fold rows into the lane axis (free contiguous reshape) --
    k = 1
    if feat < 128 and 128 % feat == 0 and (128 // feat) <= 16 and rows % (128 // feat) == 0:
        k = 128 // feat
    total_rows = rows // k
    lane = feat * k                         # 128 on the packed path, feat otherwise
    xk = x2.reshape(total_rows, lane) if k > 1 else x2
    # TODO(synk): rows % k != 0 or feat not dividing 128 falls back to the
    #             lane-sparse plain path; very large feat would want a
    #             feature-tiled online-softmax path.

    # ---- VMEM / block budgeting (generation aware) ----------------------------
    vmem_cap = _vmem_capacity_bytes()
    vmem_limit = int(vmem_cap * 0.7)        # ~44.8 MiB on v7x, ~89.6 MiB on v5e/v6e
    # 2 input + 2 output double-buffered blocks plus ~2 blocks of f32 temporaries.
    block_cap = vmem_limit // 6             # ~7.5 MiB v7x, ~15 MiB v5e/v6e per block
    if max_block_bytes is not None:
        block_cap = min(block_cap, int(max_block_bytes))

    row_bytes = lane * itemsize
    row_tile = max(pack, (block_cap // row_bytes) // pack * pack)
    if row_tile >= total_rows:
        row_tile = total_rows               # single block; full-extent shape is legal
    grid_rows = pl.cdiv(total_rows, row_tile)   # ragged tail: OOB reads are row-local
                                                # garbage, OOB writes are dropped.

    kernel = functools.partial(_softmax_kernel, feat=feat, k=k)
    n_elems = total_rows * lane

    out = pl.pallas_call(
        kernel,
        out_shape=jax.ShapeDtypeStruct((total_rows, lane), x.dtype),
        grid_spec=pltpu.PrefetchScalarGridSpec(
            num_scalar_prefetch=0,
            grid=(grid_rows,),
            # TODO(synk): sweep pipeline_mode=pl.Buffered(3) if DMA turnaround
            #             is still exposed at step boundaries in profiles.
            in_specs=[pl.BlockSpec((row_tile, lane), lambda i: (i, 0))],
            out_specs=pl.BlockSpec((row_tile, lane), lambda i: (i, 0)),
        ),
        compiler_params=pltpu.CompilerParams(
            dimension_semantics=("parallel",),   # row axis megacore-shardable (v7x)
            vmem_limit_bytes=vmem_limit,
        ),
        cost_estimate=pl.CostEstimate(
            flops=5 * n_elems,
            transcendentals=n_elems,
            bytes_accessed=2 * n_elems * itemsize,
        ),
    )(xk)

    return out.reshape(orig_shape)


def _reference(x):
    c = jnp.max(x, axis=-1, keepdims=True)
    e = jnp.exp(x - c)
    return e / jnp.sum(e, axis=-1, keepdims=True)


if __name__ == "__main__":
    key = jax.random.PRNGKey(0)
    k0, k1, k2, k3 = jax.random.split(key, 4)

    # Primary example: seq=8, hidden=32 (lane-packed path: 4 rows per 128-lane row).
    x = jax.random.normal(k0, (8, 32), dtype=jnp.float32)
    y = jax.block_until_ready(softmax_stable(x))
    ref = _reference(x)
    assert y.shape == x.shape and y.dtype == x.dtype
    assert jnp.allclose(y, ref, atol=1e-5, rtol=1e-5)
    assert jnp.allclose(jnp.sum(y, axis=-1), 1.0, atol=1e-5)

    # Higher-rank input (exercises the flatten/reshape path).
    x3 = jax.random.normal(k1, (2, 8, 32), dtype=jnp.float32)
    y3 = jax.block_until_ready(softmax_stable(x3))
    assert jnp.allclose(y3, _reference(x3), atol=1e-5, rtol=1e-5)

    # Plain (already lane-dense, feat=128) path with a non-multiple-of-8 row count.
    x4 = jax.random.normal(k2, (13, 128), dtype=jnp.float32)
    y4 = jax.block_until_ready(softmax_stable(x4))
    assert jnp.allclose(y4, _reference(x4), atol=1e-5, rtol=1e-5)

    # Packed path with a multi-block grid and a ragged tail block
    # (small max_block_bytes forces tiling so the cdiv-grid path is exercised).
    x5 = jax.random.normal(k3, (50, 64), dtype=jnp.float32)
    y5 = jax.block_until_ready(softmax_stable(x5, max_block_bytes=8 * 1024))
    assert jnp.allclose(y5, _reference(x5), atol=1e-5, rtol=1e-5)
    assert jnp.allclose(jnp.sum(y5, axis=-1), 1.0, atol=1e-5)

    print("KERNEL_OK")
</pallas_src>

<mosaic_0001>
module attributes {stable_mosaic.version = 11 : i64} {
  func.func @_softmax_kernel(%arg0: i32, %arg1: memref<2x128xf32, #tpu.memory_space<vmem>>, %arg2: memref<2x128xf32, #tpu.memory_space<vmem>>) attributes {dimension_semantics = [#tpu.dimension_semantics<parallel>], iteration_bounds = array<i64: 1>, scalar_prefetch = 0 : i64, scratch_operands = 0 : i64, tpu.core_type = #tpu.core_type<tc>, window_params = [{transform_indices = @transform_0, window_bounds = array<i64: 2, 128>}, {transform_indices = @transform_1, window_bounds = array<i64: 2, 128>}]} {
    %c0 = arith.constant 0 : index
    %c0_0 = arith.constant 0 : index
    %0 = vector.load %arg1[%c0, %c0_0] : memref<2x128xf32, #tpu.memory_space<vmem>>, vector<2x32xf32>
    %cst = arith.constant dense<0xFF800000> : vector<2xf32>
    %1 = vector.multi_reduction <maximumf>, %0, %cst [1] : vector<2x32xf32> to vector<2xf32>
    %2 = vector.shape_cast %1 : vector<2xf32> to vector<2x1xf32>
    %3 = vector.broadcast %2 : vector<2x1xf32> to vector<2x32xf32>
    %4 = arith.subf %0, %3 : vector<2x32xf32>
    %5 = math.exp %4 : vector<2x32xf32>
    %cst_1 = arith.constant dense<0.000000e+00> : vector<2xf32>
    %6 = vector.multi_reduction <add>, %5, %cst_1 [1] : vector<2x32xf32> to vector<2xf32>
    %7 = vector.shape_cast %6 : vector<2xf32> to vector<2x1xf32>
    %8 = vector.broadcast %7 : vector<2x1xf32> to vector<2x32xf32>
    %9 = arith.divf %5, %8 : vector<2x32xf32>
    %c0_2 = arith.constant 0 : index
    %c0_3 = arith.constant 0 : index
    %10 = vector.load %arg2[%c0_2, %c0_3] : memref<2x128xf32, #tpu.memory_space<vmem>>, vector<2x32xf32>
    tpu.vector_store %arg2[%c0_2, %c0_3], %9 {strides = array<i32>} : memref<2x128xf32, #tpu.memory_space<vmem>>, vector<2x32xf32>,
    %c0_4 = arith.constant 0 : index
    %c32 = arith.constant 32 : index
    %11 = vector.load %arg1[%c0_4, %c32] : memref<2x128xf32, #tpu.memory_space<vmem>>, vector<2x32xf32>
    %cst_5 = arith.constant dense<0xFF800000> : vector<2xf32>
    %12 = vector.multi_reduction <maximumf>, %11, %cst_5 [1] : vector<2x32xf32> to vector<2xf32>
    %13 = vector.shape_cast %12 : vector<2xf32> to vector<2x1xf32>
    %14 = vector.broadcast %13 : vector<2x1xf32> to vector<2x32xf32>
    %15 = arith.subf %11, %14 : vector<2x32xf32>
    %16 = math.exp %15 : vector<2x32xf32>
    %cst_6 = arith.constant dense<0.000000e+00> : vector<2xf32>
    %17 = vector.multi_reduction <add>, %16, %cst_6 [1] : vector<2x32xf32> to vector<2xf32>
    %18 = vector.shape_cast %17 : vector<2xf32> to vector<2x1xf32>
    %19 = vector.broadcast %18 : vector<2x1xf32> to vector<2x32xf32>
    %20 = arith.divf %16, %19 : vector<2x32xf32>
    %c0_7 = arith.constant 0 : index
    %c32_8 = arith.constant 32 : index
    %21 = vector.load %arg2[%c0_7, %c32_8] : memref<2x128xf32, #tpu.memory_space<vmem>>, vector<2x32xf32>
    tpu.vector_store %arg2[%c0_7, %c32_8], %20 {strides = array<i32>} : memref<2x128xf32, #tpu.memory_space<vmem>>, vector<2x32xf32>,
    %c0_9 = arith.constant 0 : index
    %c64 = arith.constant 64 : index
    %22 = vector.load %arg1[%c0_9, %c64] : memref<2x128xf32, #tpu.memory_space<vmem>>, vector<2x32xf32>
    %cst_10 = arith.constant dense<0xFF800000> : vector<2xf32>
    %23 = vector.multi_reduction <maximumf>, %22, %cst_10 [1] : vector<2x32xf32> to vector<2xf32>
    %24 = vector.shape_cast %23 : vector<2xf32> to vector<2x1xf32>
    %25 = vector.broadcast %24 : vector<2x1xf32> to vector<2x32xf32>
    %26 = arith.subf %22, %25 : vector<2x32xf32>
    %27 = math.exp %26 : vector<2x32xf32>
    %cst_11 = arith.constant dense<0.000000e+00> : vector<2xf32>
    %28 = vector.multi_reduction <add>, %27, %cst_11 [1] : vector<2x32xf32> to vector<2xf32>
    %29 = vector.shape_cast %28 : vector<2xf32> to vector<2x1xf32>
    %30 = vector.broadcast %29 : vector<2x1xf32> to vector<2x32xf32>
    %31 = arith.divf %27, %30 : vector<2x32xf32>
    %c0_12 = arith.constant 0 : index
    %c64_13 = arith.constant 64 : index
    %32 = vector.load %arg2[%c0_12, %c64_13] : memref<2x128xf32, #tpu.memory_space<vmem>>, vector<2x32xf32>
    tpu.vector_store %arg2[%c0_12, %c64_13], %31 {strides = array<i32>} : memref<2x128xf32, #tpu.memory_space<vmem>>, vector<2x32xf32>,
    %c0_14 = arith.constant 0 : index
    %c96 = arith.constant 96 : index
    %33 = vector.load %arg1[%c0_14, %c96] : memref<2x128xf32, #tpu.memory_space<vmem>>, vector<2x32xf32>
    %cst_15 = arith.constant dense<0xFF800000> : vector<2xf32>
    %34 = vector.multi_reduction <maximumf>, %33, %cst_15 [1] : vector<2x32xf32> to vector<2xf32>
    %35 = vector.shape_cast %34 : vector<2xf32> to vector<2x1xf32>
    %36 = vector.broadcast %35 : vector<2x1xf32> to vector<2x32xf32>
    %37 = arith.subf %33, %36 : vector<2x32xf32>
    %38 = math.exp %37 : vector<2x32xf32>
    %cst_16 = arith.constant dense<0.000000e+00> : vector<2xf32>
    %39 = vector.multi_reduction <add>, %38, %cst_16 [1] : vector<2x32xf32> to vector<2xf32>
    %40 = vector.shape_cast %39 : vector<2xf32> to vector<2x1xf32>
    %41 = vector.broadcast %40 : vector<2x1xf32> to vector<2x32xf32>
    %42 = arith.divf %38, %41 : vector<2x32xf32>
    %c0_17 = arith.constant 0 : index
    %c96_18 = arith.constant 96 : index
    %43 = vector.load %arg2[%c0_17, %c96_18] : memref<2x128xf32, #tpu.memory_space<vmem>>, vector<2x32xf32>
    tpu.vector_store %arg2[%c0_17, %c96_18], %42 {strides = array<i32>} : memref<2x128xf32, #tpu.memory_space<vmem>>, vector<2x32xf32>,
    return
  }
  func.func @transform_0(%arg0: i32) -> (i32, i32) {
    %c0_i32 = arith.constant 0 : i32
    %c0_i32_0 = arith.constant 0 : i32
    return %arg0, %c0_i32 : i32, i32
  }
  func.func @transform_1(%arg0: i32) -> (i32, i32) {
    %c0_i32 = arith.constant 0 : i32
    %c0_i32_0 = arith.constant 0 : i32
    return %arg0, %c0_i32 : i32, i32
  }
}

</mosaic_0001>

<bundles_post_ra>
// kernel: tpu_custom_call.1
= control target key start
LH: loop header
LB: loop body
LE: loop exit
PB: predicated region body
PF: predicated region fallthrough
CT: control target
= control target key end

     0   :  { %6 = vsyncpa [#allocation3], 0  ;;  %s224_s0 = inlined_call_operand.hbm [shape: f32[2,128], index: 0, kind: input, shape index: {}]   ;;  %s225_s1 = inlined_call_operand.hbm [shape: f32[2,128], index: 1, kind: output, shape index: {}]  }
   0x1   :  { %7 = vsyncpa [#allocation4], 0  ;;  %s173_s6 = smov [#allocation2]   ;;  %s125_s10 = scalar_lea.hbm %s224_s0, 32 }
   0x2   :  { %s14_s7 = sshll.u32 %s173_s6, 4  ;;  %p126_p0 = scmp.ne.s32.totalorder %s224_s0, %s125_s10  ;;  %s15_s7 = int_to_ptr.vmem [resolvable:$true] %s14_s7 }
   0x3   :  { %p129_p1 = scmp.lt.u32.totalorder %s125_s10, %s224_s0 }
   0x5   :  { %p131_p2 = pnand %p129_p1, %p126_p0 }
   0x7   :  { %134 = shalt.err (!%p131_p2)
}
   0x8   :  { %s135_s15 = scalar_lea.vmem %s15_s7, 32  ;;  %p140_p4 = scmp.lt.s32.totalorder %s15_s7, %s15_s7 }
   0x9   :  { %p136_p3 = scmp.ne.s32.totalorder %s15_s7, %s135_s15  ;;  %p141_p5 = scmp.lt.s32.totalorder %s135_s15, %s135_s15 }
   0xb   :  { %p142_p6 = por %p141_p5, %p140_p4 }
   0xd   :  { %p143_p7 = pnand %p142_p6, %p136_p3 }
   0xf   :  { %146 = shalt.err (!%p143_p7)
}
  0x10   :  { %17 = dma.hbm_to_vmem [thread:$0]  %s224_s0, 32, %s15_s7, [#allocation3]  }
  0x11   :  { %169 = dma.done.wait [#allocation3], 32  }
  0x12   :  { %170 = vsyncadd [#allocation3], 4294967264  ;;  %vm36_vm0 = vcmask 517376   ;;  %vm72_vm1 = vcmask 1042176   ;;  %vm54_vm2 = vcmask 779776   ;;  %vm22_vm3 = vcmask 254976  }
  0x13   :  { %v35_v0 = vld [vmem:[#allocation2] sm:$0x3]  ;;  %s174_s0 = smov 96   ;;  %s175_s18 = smov 64  }
  0x14   :  { %v53_v1 = vld [vmem:[#allocation2] sm:$0x3]  ;;  %v37_v3 = vsel %vm36_vm0, %v35_v0, -inf  ;;  %s176_s19 = smov 32   ;;  %s177_s20 = smov [#allocation5]  }
  0x15   :  { %v71_v2 = vld [vmem:[#allocation2] sm:$0x3]  ;;  %38 = vmax.xlane.f32.xlu0 %v37_v3  ;;  %v55_v6 = vsel %vm54_vm2, %v53_v1, -inf  ;;  %s95_s21 = sshll.u32 %s177_s20, 4  ;;  %s96_s21 = int_to_ptr.vmem [resolvable:$true] %s95_s21 }
  0x16   :  { %v73_v4 = vsel %vm72_vm1, %v71_v2, -inf  ;;  %v21_v5 = vld [vmem:[#allocation2] sm:$0x3]  ;;  %s147_s22 = scalar_lea.vmem %s96_s21, 32  ;;  %p152_p9 = scmp.lt.s32.totalorder %s96_s21, %s96_s21 }
  0x17   :  { %74 = vmax.xlane.f32.xlu1 %v73_v4  ;;  %v23_v7 = vsel %vm22_vm3, %v21_v5, -inf  ;;  %p148_p8 = scmp.ne.s32.totalorder %s96_s21, %s147_s22  ;;  %p153_p10 = scmp.lt.s32.totalorder %s147_s22, %s147_s22 }
  0x19   :  { %56 = vmax.xlane.f32.xlu0 %v55_v6  ;;  %p154_p11 = por %p153_p10, %p152_p9 }
  0x1b   :  { %24 = vmax.xlane.f32.xlu1 %v23_v7  ;;  %p155_p12 = pnand %p154_p11, %p148_p8 }
  0xa2   :  { %v39_v8 = vpop.xlane.xlu0 %38 }
  0xa3   :  { %v40_v10 = vsub.f32 %v35_v0, %v39_v8 }
  0xa4   :  { %v75_v9 = vpop.xlane.xlu1 %74 }
  0xa5   :  { %v41_v11 = vmul.f32 1.442695, %v40_v10  ;;  %v76_v12 = vsub.f32 %v71_v2, %v75_v9 }
  0xa6   :  { %v57_v13 = vpop.xlane.xlu0 %56 }
  0xa7   :  { %109 = vpow2.f32 %v41_v11  ;;  %v58_v14 = vsub.f32 %v53_v1, %v57_v13  ;;  %v77_v16 = vmul.f32 1.442695, %v76_v12 }
  0xa8   :  { %v25_v20 = vpop.xlane.xlu1 %24 }
  0xa9   :  { %v59_v15 = vmul.f32 1.442695, %v58_v14  ;;  %v26_v21 = vsub.f32 %v21_v5, %v25_v20 }
  0xab   :  { %111 = vpow2.f32 %v59_v15  ;;  %v27_v22 = vmul.f32 1.442695, %v26_v21 }
  0xac   :  { %113 = vpow2.f32 %v77_v16 }
  0xad   :  { %115 = vpow2.f32 %v27_v22 }
  0xb1   :  { %v110_v17 = vpop.eup %109 }
  0xb2   :  { %44 = vrot.lane.b32.xlu0 %v110_v17, %s174_s0 }
  0xb5   :  { %v112_v18 = vpop.eup %111 }
  0xb6   :  { %62 = vrot.lane.b32.xlu1 %v112_v18, %s175_s18  ;;  %v114_v19 = vpop.eup %113 }
  0xb7   :  { %v116_v23 = vpop.eup %115 }
  0xb8   :  { %v29_v24 = vsel %vm22_vm3, %v116_v23, 0.0 }
  0xba   :  { %80 = vrot.lane.b32.xlu1 %v114_v19, %s176_s19 }
  0xde   :  { %30 = vadd.xlane.f32.xlu1 %v29_v24 }
 0x124   :  { %v45_v25 = vpop.permute.xlu0 %44 }
 0x125   :  { %v47_v26 = vsel %vm22_vm3, %v45_v25, 0.0 }
 0x126   :  { %48 = vadd.xlane.f32.xlu0 %v47_v26 }
 0x128   :  { %v63_v27 = vpop.permute.xlu1 %62 }
 0x129   :  { %v65_v28 = vsel %vm22_vm3, %v63_v27, 0.0 }
 0x12a   :  { %66 = vadd.xlane.f32.xlu0 %v65_v28 }
 0x12c   :  { %v81_v29 = vpop.permute.xlu1 %80 }
 0x12d   :  { %v83_v30 = vsel %vm22_vm3, %v81_v29, 0.0 }
 0x12e   :  { %84 = vadd.xlane.f32.xlu0 %v83_v30 }
 0x16b   :  { %v31_v31 = vpop.xlane.xlu1 %30 }
 0x16c   :  { %117 = vrcp.f32 %v31_v31 }
 0x176   :  { %v118_v32 = vpop.eup %117 }
 0x177   :  { %v33_v33 = vmul.f32 %v118_v32, %v116_v23 }
 0x179   :  { %34 = vst.msk [vmem:[#allocation5] sm:$0x3] %vm22_vm3, %v33_v33 }
 0x1b3   :  { %v49_v34 = vpop.xlane.xlu0 %48 }
 0x1b4   :  { %119 = vrcp.f32 %v49_v34 }
 0x1b7   :  { %v67_v35 = vpop.xlane.xlu0 %66 }
 0x1b8   :  { %121 = vrcp.f32 %v67_v35 }
 0x1bb   :  { %v85_v36 = vpop.xlane.xlu0 %84 }
 0x1bc   :  { %123 = vrcp.f32 %v85_v36 }
 0x1be   :  { %v120_v37 = vpop.eup %119 }
 0x1bf   :  { %v51_v38 = vmul.f32 %v120_v37, %v110_v17 }
 0x1c1   :  { %52 = vst.msk [vmem:[#allocation5] sm:$0x3] %vm36_vm0, %v51_v38 }
 0x1c2   :  { %v122_v39 = vpop.eup %121 }
 0x1c3   :  { %v69_v40 = vmul.f32 %v122_v39, %v112_v18 }
 0x1c5   :  { %70 = vst.msk [vmem:[#allocation5] sm:$0x3] %vm54_vm2, %v69_v40 }
 0x1c6   :  { %v124_v41 = vpop.eup %123 }
 0x1c7   :  { %v87_v42 = vmul.f32 %v124_v41, %v114_v19 }
 0x1c9   :  { %88 = vst.msk [vmem:[#allocation5] sm:$0x3] %vm72_vm1, %v87_v42 }
 0x1ca   :  { %158 = shalt.err (!%p155_p12)
}
 0x1cb   :  { %s159_s25 = scalar_lea.hbm %s225_s1, 32 }
 0x1cc   :  { %p160_p13 = scmp.ne.s32.totalorder %s225_s1, %s159_s25  ;;  %p163_p0 = scmp.lt.u32.totalorder %s159_s25, %s225_s1 }
 0x1ce   :  { %p165_p1 = pnand %p163_p0, %p160_p13 }
 0x1d0   :  { %168 = shalt.err (!%p165_p1)
}
 0x1d1   :  { %98 = dma.vmem_to_hbm [thread:$0]  %s96_s21, 32, %s225_s1, [#allocation4]  }
 0x1d2   :  { %171 = dma.done.wait [#allocation4], 32  }
 0x1d3   :  { %172 = vsyncadd [#allocation4], 4294967264 }
 0x1d4   :  { %102 = vsyncpa [#allocation3], 1 }
 0x1d5   :  { %103 = vsyncpa [#allocation4], 1 }

</bundles_post_ra>
